<compile_context>
chip_gen: v7x
topology: tpu7x:2x2x1
jax: 0.10.0
libtpu: 0.0.40
codegen_flags: <defaults>
</compile_context>

<pallas_src>
import functools

import jax
import jax.numpy as jnp
from jax import lax
from jax.experimental import pallas as pl
from jax.experimental.pallas import tpu as pltpu


_SMALL_C_MAX = 64                        # below this an MXU cumsum wastes >99% of the array
_ROW_TILE_CAP = 1024                     # 512-1024 row tiles ~ HBM roofline
_VMEM_BUDGET_PER_BUF = 4 * 1024 * 1024   # per input, per pipeline buffer


def _round_down_to(x, m):
    return (x // m) * m


def _choose_row_tile(n, c, itemsize):
    """Pick TM: multiple of 8 (or the full N for tiny batches), VMEM-budget capped."""
    if n <= 8:
        return n
    per_row_bytes = max(c, 128) * itemsize      # lane dim pads to >= 128 in VMEM
    cap = max(8, _round_down_to(
        min(_ROW_TILE_CAP, _VMEM_BUDGET_PER_BUF // per_row_bytes), 8))
    return max(8, min(cap, _round_down_to(n, 8)))


def _edm_partials_small_c_kernel(pt_ref, pe_ref, out_ref, *, n_rows, row_tile, n_bins,
                                 padded_rows):
    """Per-row-tile partial sum of squared CDF differences (VPU prefix sum, small C)."""
    pt = pt_ref[...].astype(jnp.float32)
    pe = pe_ref[...].astype(jnp.float32)
    diff = pe - pt                           # cumsum(pe) - cumsum(pt) == cumsum(diff)

    if padded_rows != n_rows:                # mask rows past the true batch size
        row = pl.program_id(0) * row_tile + lax.broadcasted_iota(
            jnp.int32, (row_tile, 1), 0)
        diff = jnp.where(row < n_rows, diff, 0.0)

    # Unrolled prefix sum along the (small, static) class axis; accumulate squares.
    running = diff[:, 0:1]
    sq_sum = running * running
    for j in range(1, n_bins):
        running = running + diff[:, j:j + 1]
        sq_sum = sq_sum + running * running

    partial = jnp.sum(sq_sum)
    out_ref[...] = jnp.broadcast_to(partial, out_ref.shape)


def _edm_partials_matmul_kernel(pt_ref, pe_ref, tri_ref, out_ref, *, n_rows, row_tile,
                                padded_rows):
    """Per-row-tile partial sum of squared CDF differences (MXU cumsum, large C)."""
    diff = pe_ref[...] - pt_ref[...]         # keep input dtype (bf16 stays bf16 for MXU)

    if padded_rows != n_rows:
        row = pl.program_id(0) * row_tile + lax.broadcasted_iota(
            jnp.int32, (row_tile, 1), 0)
        diff = jnp.where(row < n_rows, diff, jnp.zeros_like(diff))

    cdf_diff = jnp.dot(diff, tri_ref[...], preferred_element_type=jnp.float32)
    partial = jnp.sum(cdf_diff * cdf_diff)
    out_ref[...] = jnp.broadcast_to(partial, out_ref.shape)


def edm_loss(p_target, p_estimate, *, row_tile=None):
    assert p_target.shape == p_estimate.shape
    assert p_target.ndim == 2, "EDMLoss expects (batch, n_bins) inputs"
    n, c = p_target.shape
    itemsize = jnp.dtype(p_target.dtype).itemsize

    tm = _choose_row_tile(n, c, itemsize) if row_tile is None else row_tile
    assert tm == n or tm % 8 == 0, "row tile must be a multiple of 8 (or the full batch)"
    num_blocks = pl.cdiv(n, tm)
    padded_rows = num_blocks * tm

    # Lane-dense per-block partials: each grid step writes one (8, 128) f32 tile.
    out_shape = jax.ShapeDtypeStruct((num_blocks, 8, 128), jnp.float32)
    out_spec = pl.BlockSpec((1, 8, 128), lambda i: (i, 0, 0))
    in_spec = pl.BlockSpec((tm, c), lambda i: (i, 0))
    out_bytes = num_blocks * 8 * 128 * 4

    compiler_params = pltpu.CompilerParams(
        dimension_semantics=("parallel",),    # shard row tiles across TensorCores
        vmem_limit_bytes=32 * 1024 * 1024,
    )

    if c <= _SMALL_C_MAX:
        kernel = functools.partial(
            _edm_partials_small_c_kernel,
            n_rows=n, row_tile=tm, n_bins=c, padded_rows=padded_rows)
        cost = pl.CostEstimate(
            flops=6 * n * c, transcendentals=0,
            bytes_accessed=2 * n * c * itemsize + out_bytes)
        partials = pl.pallas_call(
            kernel,
            out_shape=out_shape,
            grid=(num_blocks,),
            in_specs=[in_spec, in_spec],
            out_specs=out_spec,
            compiler_params=compiler_params,
            cost_estimate=cost,
        )(p_target, p_estimate)
    else:
        # Upper-triangular ones: T[k, j] = 1 if k <= j, so diff @ T == cumsum(diff, 1).
        # Built once here; its constant index_map keeps it VMEM-resident across steps.
        # NOTE: for very large C (C*C*itemsize approaching VMEM) the triangular matrix
        # would itself need tiling over the contraction axis; typical EDM bin counts
        # are far below that.
        idx = jnp.arange(c, dtype=jnp.int32)
        tri = (idx[:, None] <= idx[None, :]).astype(p_target.dtype)
        kernel = functools.partial(
            _edm_partials_matmul_kernel,
            n_rows=n, row_tile=tm, padded_rows=padded_rows)
        cost = pl.CostEstimate(
            flops=2 * n * c * c, transcendentals=0,
            bytes_accessed=(2 * n * c + c * c) * itemsize + out_bytes)
        partials = pl.pallas_call(
            kernel,
            out_shape=out_shape,
            grid=(num_blocks,),
            in_specs=[in_spec, in_spec, pl.BlockSpec((c, c), lambda i: (0, 0))],
            out_specs=out_spec,
            compiler_params=compiler_params,
            cost_estimate=cost,
        )(p_target, p_estimate, tri)

    total_sq = jnp.sum(partials[:, 0, 0])
    return jnp.sqrt(total_sq / jnp.float32(n * c))


def edm_loss_ref(p_target, p_estimate):
    cdf_t = jnp.cumsum(p_target.astype(jnp.float32), axis=1)
    cdf_e = jnp.cumsum(p_estimate.astype(jnp.float32), axis=1)
    d = cdf_e - cdf_t
    return jnp.sqrt(jnp.mean(d * d))


if __name__ == "__main__":
    key = jax.random.PRNGKey(0)
    k1, k2, k3, k4 = jax.random.split(key, 4)

    # Small-C path (8-bin score distributions): 3 row blocks, last one partial+masked.
    N1, C1 = 20, 8
    pt1 = jax.nn.softmax(jax.random.normal(k1, (N1, C1), dtype=jnp.float32), axis=1)
    pe1 = jax.nn.softmax(jax.random.normal(k2, (N1, C1), dtype=jnp.float32), axis=1)
    loss1 = jax.block_until_ready(edm_loss(pt1, pe1, row_tile=8))
    ref1 = edm_loss_ref(pt1, pe1)
    assert jnp.allclose(loss1, ref1, rtol=1e-5, atol=1e-6), (loss1, ref1)

    # Large-C path (C=128): MXU cumsum with a VMEM-resident triangular matrix.
    N2, C2 = 16, 128
    pt2 = jax.nn.softmax(jax.random.normal(k3, (N2, C2), dtype=jnp.float32), axis=1)
    pe2 = jax.nn.softmax(jax.random.normal(k4, (N2, C2), dtype=jnp.float32), axis=1)
    loss2 = jax.block_until_ready(edm_loss(pt2, pe2))
    ref2 = edm_loss_ref(pt2, pe2)
    # f32 matmuls may run at reduced (bf16-pass) MXU precision -> looser tolerance.
    assert jnp.allclose(loss2, ref2, rtol=1e-2, atol=1e-4), (loss2, ref2)

    print("KERNEL_OK")
</pallas_src>

<mosaic_0001>
module attributes {stable_mosaic.version = 11 : i64} {
  func.func @_edm_partials_small_c_kernel(%arg0: i32, %arg1: memref<8x8xf32, #tpu.memory_space<vmem>>, %arg2: memref<8x8xf32, #tpu.memory_space<vmem>>, %arg3: memref<1x8x128xf32, #tpu.memory_space<vmem>>) attributes {dimension_semantics = [#tpu.dimension_semantics<parallel>], iteration_bounds = array<i64: 3>, scalar_prefetch = 0 : i64, scratch_operands = 0 : i64, tpu.core_type = #tpu.core_type<tc>, window_params = [{transform_indices = @transform_0, window_bounds = array<i64: 8, 8>}, {transform_indices = @transform_1, window_bounds = array<i64: 8, 8>}, {transform_indices = @transform_2, window_bounds = array<i64: 1, 8, 128>}]} {
    %c0 = arith.constant 0 : index
    %c0_0 = arith.constant 0 : index
    %0 = vector.load %arg1[%c0, %c0_0] : memref<8x8xf32, #tpu.memory_space<vmem>>, vector<8x8xf32>
    %c0_1 = arith.constant 0 : index
    %c0_2 = arith.constant 0 : index
    %1 = vector.load %arg2[%c0_1, %c0_2] : memref<8x8xf32, #tpu.memory_space<vmem>>, vector<8x8xf32>
    %2 = arith.subf %1, %0 : vector<8x8xf32>
    %c8_i32 = arith.constant 8 : i32
    %3 = arith.muli %arg0, %c8_i32 : i32
    %4 = tpu.iota {dimensions = array<i32: 0>} : vector<8x1xi32>
    %5 = vector.broadcast %3 : i32 to vector<8x1xi32>
    %6 = arith.addi %5, %4 : vector<8x1xi32>
    %c20_i32 = arith.constant 20 : i32
    %7 = vector.broadcast %c20_i32 : i32 to vector<8x1xi32>
    %8 = arith.cmpi slt, %6, %7 : vector<8x1xi32>
    %cst = arith.constant 0.000000e+00 : f32
    %9 = vector.shape_cast %8 : vector<8x1xi1> to vector<8x1xi1>
    %10 = vector.broadcast %9 : vector<8x1xi1> to vector<8x8xi1>
    %11 = vector.broadcast %cst : f32 to vector<8x8xf32>
    %12 = arith.select %10, %2, %11 : vector<8x8xi1>, vector<8x8xf32>
    %13 = vector.extract_strided_slice %12 {offsets = [0, 0], sizes = [8, 1], strides = [1, 1]} : vector<8x8xf32> to vector<8x1xf32>
    %14 = arith.mulf %13, %13 : vector<8x1xf32>
    %15 = vector.extract_strided_slice %12 {offsets = [0, 1], sizes = [8, 1], strides = [1, 1]} : vector<8x8xf32> to vector<8x1xf32>
    %16 = arith.addf %13, %15 : vector<8x1xf32>
    %17 = arith.mulf %16, %16 : vector<8x1xf32>
    %18 = arith.addf %14, %17 : vector<8x1xf32>
    %19 = vector.extract_strided_slice %12 {offsets = [0, 2], sizes = [8, 1], strides = [1, 1]} : vector<8x8xf32> to vector<8x1xf32>
    %20 = arith.addf %16, %19 : vector<8x1xf32>
    %21 = arith.mulf %20, %20 : vector<8x1xf32>
    %22 = arith.addf %18, %21 : vector<8x1xf32>
    %23 = vector.extract_strided_slice %12 {offsets = [0, 3], sizes = [8, 1], strides = [1, 1]} : vector<8x8xf32> to vector<8x1xf32>
    %24 = arith.addf %20, %23 : vector<8x1xf32>
    %25 = arith.mulf %24, %24 : vector<8x1xf32>
    %26 = arith.addf %22, %25 : vector<8x1xf32>
    %27 = vector.extract_strided_slice %12 {offsets = [0, 4], sizes = [8, 1], strides = [1, 1]} : vector<8x8xf32> to vector<8x1xf32>
    %28 = arith.addf %24, %27 : vector<8x1xf32>
    %29 = arith.mulf %28, %28 : vector<8x1xf32>
    %30 = arith.addf %26, %29 : vector<8x1xf32>
    %31 = vector.extract_strided_slice %12 {offsets = [0, 5], sizes = [8, 1], strides = [1, 1]} : vector<8x8xf32> to vector<8x1xf32>
    %32 = arith.addf %28, %31 : vector<8x1xf32>
    %33 = arith.mulf %32, %32 : vector<8x1xf32>
    %34 = arith.addf %30, %33 : vector<8x1xf32>
    %35 = vector.extract_strided_slice %12 {offsets = [0, 6], sizes = [8, 1], strides = [1, 1]} : vector<8x8xf32> to vector<8x1xf32>
    %36 = arith.addf %32, %35 : vector<8x1xf32>
    %37 = arith.mulf %36, %36 : vector<8x1xf32>
    %38 = arith.addf %34, %37 : vector<8x1xf32>
    %39 = vector.extract_strided_slice %12 {offsets = [0, 7], sizes = [8, 1], strides = [1, 1]} : vector<8x8xf32> to vector<8x1xf32>
    %40 = arith.addf %36, %39 : vector<8x1xf32>
    %41 = arith.mulf %40, %40 : vector<8x1xf32>
    %42 = arith.addf %38, %41 : vector<8x1xf32>
    %43 = vector.shape_cast %42 : vector<8x1xf32> to vector<1x8x1xf32>
    %cst_3 = arith.constant dense<0.000000e+00> : vector<1xf32>
    %44 = vector.multi_reduction <add>, %43, %cst_3 [1, 2] : vector<1x8x1xf32> to vector<1xf32>
    %45 = vector.shape_cast %44 : vector<1xf32> to vector<1x1x1xf32>
    %46 = vector.extract %45[0, 0, 0] : f32 from vector<1x1x1xf32>
    %47 = vector.broadcast %46 : f32 to vector<1x8x128xf32>
    %c0_4 = arith.constant 0 : index
    %c0_5 = arith.constant 0 : index
    %c0_6 = arith.constant 0 : index
    %48 = vector.load %arg3[%c0_4, %c0_5, %c0_6] : memref<1x8x128xf32, #tpu.memory_space<vmem>>, vector<1x8x128xf32>
    tpu.vector_store %arg3[%c0_4, %c0_5, %c0_6], %47 {strides = array<i32>} : memref<1x8x128xf32, #tpu.memory_space<vmem>>, vector<1x8x128xf32>,
    return
  }
  func.func @transform_0(%arg0: i32) -> (i32, i32) {
    %c0_i32 = arith.constant 0 : i32
    %c0_i32_0 = arith.constant 0 : i32
    return %arg0, %c0_i32 : i32, i32
  }
  func.func @transform_1(%arg0: i32) -> (i32, i32) {
    %c0_i32 = arith.constant 0 : i32
    %c0_i32_0 = arith.constant 0 : i32
    return %arg0, %c0_i32 : i32, i32
  }
  func.func @transform_2(%arg0: i32) -> (i32, i32, i32) {
    %c0_i32 = arith.constant 0 : i32
    %c0_i32_0 = arith.constant 0 : i32
    %c0_i32_1 = arith.constant 0 : i32
    return %arg0, %c0_i32, %c0_i32_0 : i32, i32, i32
  }
}

</mosaic_0001>

<bundles_post_ra>
// kernel: tpu_custom_call.1
= control target key start
LH: loop header
LB: loop body
LE: loop exit
PB: predicated region body
PF: predicated region fallthrough
CT: control target
= control target key end

     0   :  { %7 = vsyncpa [#allocation3], 0  ;;  %s561_s0 = inlined_call_operand.vmem [shape: f32[20,8], index: 0, kind: input, shape index: {}]   ;;  %s562_s1 = inlined_call_operand.vmem [shape: f32[20,8], index: 1, kind: input, shape index: {}]   ;;  %s563_s2 = inlined_call_operand.hbm [shape: f32[3,8,128], index: 2, kind: output, shape index: {}]  }
   0x1   :  { %9 = vsyncpa [#allocation3 + $0x1], 0  ;;  %s457_s9 = smov 0   ;;  %s459_s10 = smov 0  }
   0x2   :  { %s461_s11 = smov 0   ;;  %s463_s12 = smov 0  }
   0x3 LB: > { %s478_s13 = sadd.s32 4294967295, %s432_s12   ;;  %s310_s14 = sadd.s32 4294967294, %s432_s12   ;;  %s432_s12 = sphi %s463_s12, %s569_s12   ;;  %s428_s11 = sphi %s461_s11, %s568_s11   ;;  %s424_s10 = sphi %s459_s10, %s567_s10   ;;  %s420_s9 = sphi %s457_s9, %s566_s9  }
   0x4   : > { %s482_s15 = sadd.s32 1, %s432_s12   ;;  %s74_s16 = sadd.s32 1, %s428_s11 }
   0x5   : > { %s71_s17 = ssub.s32 %s432_s12, %s482_s15  ;;  %p84_p0 = scmp.ne.s32.totalorder %s428_s11, %s424_s10 }
   0x6   : > { %p72_p1 = scmp.eq.s32.totalorder %s71_s17, 0  ;;  %p85_p2 = scmp.eq.s32.totalorder %s478_s13, 2 }
   0x7   : > { %p90_p3 = scmp.ne.s32.totalorder %s424_s10, %s420_s9  ;;  %p91_p4 = scmp.eq.s32.totalorder %s310_s14, 2 }
   0x8   : > { %s493_s18 = scalar_select %p72_p1, %s428_s11, %s74_s16  }
   0x9   : > { %p495_p5 = por %p85_p2, %p84_p0  ;;  %p499_p6 = por %p91_p4, %p90_p3 }
   0xa   : > { %p313_p7 = scmp.ge.s32.totalorder %s432_s12, 1  ;;  %p123_p8 = scmp.lt.s32.totalorder %s432_s12, 4 }
   0xc   : > { %p124_p9 = pnand %p313_p7, %p123_p8 }
   0xd   : > { %p148_p10 = scmp.lt.s32.totalorder (!%p124_p9), %s478_s13, 2  ;;  %s317_s21 = sshll.u32 (!%p124_p9), %s478_s13, 3  ;;  %v160_v0 = vlaneseq (!%p124_p9)  ;;  %vm212_vm1 = vcmask (!%p124_p9), 7168  }
   0xe   : > { %127 = sbr.rel (%p124_p9) target bundleno = 385 (0x181), region = 28  ;;  %v162_v1 = vstv (!%p124_p9), %s317_s21  ;;  %s434_s30 = smov (!%p124_p9), 127  }
   0xf   : > { %v161_v2 = vshrl.u32 (!%p124_p9), %v160_v0, 7  ;;  %s435_s3 = smov (!%p124_p9), 125   ;;  %s436_s4 = smov (!%p124_p9), 126  }
  0x10   : > { %s437_s5 = smov (!%p124_p9), 124   ;;  %s438_s6 = smov (!%p124_p9), 123  }
  0x11   : > { %v163_v3 = vadd.s32 (!%p124_p9), %v162_v1, %v161_v2  ;;  %s439_s7 = smov (!%p124_p9), 122   ;;  %s440_s8 = smov (!%p124_p9), 121  }
  0x12   : > { %s145_s14 = sand.u32 (!%p124_p9), 1, %s424_s10  }
  0x13   : > { %vm164_vm0 = vcmp.lt.s32.totalorder (!%p124_p9), %v163_v3, 20  ;;  %s314_s16 = sshll.u32 (!%p124_p9), %s145_s14, 3  ;;  %s226_s27 = scalar_lea.sflag (!%p124_p9), [#allocation3], %s145_s14 }
  0x14   : > { %s147_s17 = scalar_lea.vmem (!%p124_p9), [#allocation2], %s314_s16 }
  0x15   : > { %s149_s22 = scalar_select %p148_p10, %s478_s13, 2 }
  0x16   : > { %s239_s21 = sshll.u32 %s147_s17, 4  ;;  %s516_s21 = int_to_ptr.vmem [resolvable:$true] %s239_s21 }
  0x17   : > { %s315_s23 = sshll.u32 %s149_s22, 3  ;;  %s319_s22 = sshll.u32 %s478_s13, 7 }
  0x18   : > { %s151_s26 = scalar_lea.vmem %s561_s0, %s315_s23  ;;  %s155_s29 = scalar_lea.vmem %s562_s1, %s315_s23 }
  0x19   : > { %v156_v4 = vld [vmem:[%s151_s26] sm:$0xff]  ;;  %s521_s26 = scalar_lea.hbm %s563_s2, %s319_s22  ;;  %s370_s28 = scalar_lea.vmem %s516_s21, 128 }
  0x1a   : > { %v157_v5 = vld [vmem:[%s155_s29] sm:$0xff]  ;;  %p371_p11 = scmp.ne.s32.totalorder %s516_s21, %s370_s28  ;;  %s441_s13 = smov [#allocation2]  }
  0x1b   : > { %v158_v6 = vsub.f32 %v157_v5, %v156_v4  ;;  %s374_s29 = sshll.u32 %s441_s13, 4  ;;  %s375_s29 = int_to_ptr.vmem [resolvable:$false] %s374_s29 }
  0x1c   : > { %p372_p12 = pnand %p371_p11, %p495_p5  ;;  %p377_p0 = scmp.lt.s32.totalorder %s516_s21, %s375_s29 }
  0x1d   : > { %v167_v7 = vsel %vm164_vm0, %v158_v6, 0.0 }
  0x1e   : > { %170 = vrot.lane.b32.xlu0 %v167_v7, %s434_s30  ;;  %182 = vrot.lane.b32.xlu1 %v167_v7, %s435_s3  ;;  %v168_v11 = vmul.f32 %v167_v7, %v167_v7  ;;  %p373_p13 = pneg %p372_p12  ;;  %s376_s30 = scalar_lea.vmem %s375_s29, 256 }
  0x1f   : > { %p378_p1 = scmp.lt.s32.totalorder %s376_s30, %s370_s28 }
  0x21   : > { %p379_p2 = por %p378_p1, %p377_p0 }
  0x22   : > { %176 = vrot.lane.b32.xlu0 %v167_v7, %s436_s4  ;;  %188 = vrot.lane.b32.xlu1 %v167_v7, %s437_s5 }
  0x23   : > { %p380_p3 = pnand %p379_p2, %p373_p13 }
  0x26   : > { %194 = vrot.lane.b32.xlu0 %v167_v7, %s438_s6  ;;  %200 = vrot.lane.b32.xlu1 %v167_v7, %s439_s7 }
  0x2a   : > { %206 = vrot.lane.b32.xlu0 %v167_v7, %s440_s8 }
  0x90   : > { %v171_v8 = vpop.permute.xlu0 %170  ;;  %v183_v9 = vpop.permute.xlu1 %182 }
  0x91   : > { %v173_v10 = vadd.f32 %v171_v8, %v167_v7 }
  0x93   : > { %v174_v12 = vmul.f32 %v173_v10, %v173_v10 }
  0x94   : > { %v177_v13 = vpop.permute.xlu0 %176  ;;  %v189_v14 = vpop.permute.xlu1 %188 }
  0x95   : > { %v179_v15 = vadd.f32 %v177_v13, %v173_v10  ;;  %v175_v16 = vadd.f32 %v174_v12, %v168_v11 }
  0x97   : > { %v180_v17 = vmul.f32 %v179_v15, %v179_v15  ;;  %v185_v18 = vadd.f32 %v183_v9, %v179_v15 }
  0x98   : > { %v195_v19 = vpop.permute.xlu0 %194  ;;  %v201_v23 = vpop.permute.xlu1 %200 }
  0x99   : > { %v181_v20 = vadd.f32 %v180_v17, %v175_v16  ;;  %v186_v21 = vmul.f32 %v185_v18, %v185_v18  ;;  %v191_v22 = vadd.f32 %v189_v14, %v185_v18 }
  0x9b   : > { %v187_v24 = vadd.f32 %v186_v21, %v181_v20  ;;  %v192_v25 = vmul.f32 %v191_v22, %v191_v22  ;;  %v197_v26 = vadd.f32 %v195_v19, %v191_v22 }
  0x9c   : > { %v207_v27 = vpop.permute.xlu0 %206 }
  0x9d   : > { %v193_v28 = vadd.f32 %v192_v25, %v187_v24  ;;  %v198_v29 = vmul.f32 %v197_v26, %v197_v26  ;;  %v203_v30 = vadd.f32 %v201_v23, %v197_v26 }
  0x9f   : > { %v199_v31 = vadd.f32 %v198_v29, %v193_v28  ;;  %v204_v32 = vmul.f32 %v203_v30, %v203_v30  ;;  %v209_v33 = vadd.f32 %v207_v27, %v203_v30 }
  0xa1   : > { %v210_v34 = vmul.f32 %v209_v33, %v209_v33  ;;  %v205_v35 = vadd.f32 %v204_v32, %v199_v31 }
  0xa3   : > { %v211_v36 = vadd.f32 %v210_v34, %v205_v35 }
  0xa5   : > { %v213_v37 = vsel %vm212_vm1, %v211_v36, 0.0 }
  0xa6   : > { %214 = vadd.xlane.f32.xlu1 %v213_v37 }
 0x133   : > { %v215_v38 = vpop.xlane.xlu1 %214 }
 0x134   : > { %v216_v39 = vrot.slane %v215_v38, 4 }
 0x136   : > { %v217_v40 = vadd.f32 %v216_v39, %v215_v38 }
 0x138   : > { %v218_v41 = vrot.slane %v217_v40, 2 }
 0x13a   : > { %v219_v42 = vadd.f32 %v218_v41, %v217_v40 }
 0x13c   : > { %v220_v43 = vrot.slane %v219_v42, 1 }
 0x13e   : > { %v221_v44 = vadd.f32 %v220_v43, %v219_v42 }
 0x140   : > { %322 = vpush %v221_v44 }
 0x171   : > { %s323_s23 = spop %322 }
 0x172   : > { %v223_v45 = vstv %s323_s23 }
 0x173   : > { %224 = vst [vmem:[%s147_s17] sm:$0xff] %v223_v45 }
 0x174   : > { %383 = shalt.err (!%p380_p3)
}
 0x175   : > { %s384_s3 = scalar_lea.hbm %s521_s26, 128  ;;  %s388_s6 = scalar_lea.hbm %s563_s2, 384 }
 0x176   : > { %p385_p4 = scmp.ne.s32.totalorder %s521_s26, %s384_s3  ;;  %p389_p9 = scmp.lt.u32.totalorder %s521_s26, %s563_s2 }
 0x177   : > { %p390_p10 = scmp.lt.u32.totalorder %s388_s6, %s384_s3  ;;  %p392_p12 = scmp.lt.u32.totalorder %s384_s3, %s521_s26 }
 0x178   : > { %p386_p7 = pnand %p385_p4, %p495_p5 }
 0x179   : > { %p391_p11 = por %p390_p10, %p389_p9 }
 0x17a   : > { %p387_p8 = pneg %p386_p7 }
 0x17b   : > { %p393_p13 = por %p392_p12, %p391_p11 }
 0x17d   : > { %p394_p0 = pnand %p393_p13, %p387_p8 }
 0x17f   : > { %397 = shalt.err (!%p394_p0)
}
 0x180   : > { %324 = dma.vmem_to_hbm [thread:$0]  (%p495_p5), %s516_s21, 128, %s521_s26, %s226_s27  }
 0x181 PF: > { %p330_p1 = scmp.ge.s32.totalorder %s432_s12, 2  ;;  %s251_s14 = sand.u32 1, %s420_s9  }
 0x182   : > { %s252_s16 = scalar_lea.sflag [#allocation3], %s251_s14 }
 0x183   : > { %p327_p2 = pnand %p330_p1, %p499_p6 }
 0x185   : > { %415 = dma.done.wait (!%p327_p2), %s252_s16, 128  }
 0x186   : > { %417 = vsyncadd (!%p327_p2), %s252_s16, 4294967168  ;;  %p12_p3 = scmp.ge.s32.totalorder %s482_s15, 5   ;;  %s566_s9 = smov %s424_s10 }
 0x187   : > { %s567_s10 = smov %s428_s11  ;;  %s568_s11 = smov %s493_s18 }
 0x188   : > { %s569_s12 = smov %s482_s15  ;;  %14 = sbr.rel (!%p12_p3) target bundleno = 3 (0x3), region = 66 }
 0x18f   :  { %257 = vsyncpa [#allocation3], 1 }
 0x190   :  { %259 = vsyncpa [#allocation3 + $0x1], 1 }

</bundles_post_ra>
